<compile_context>
chip_gen: v6e
topology: v6e:2x2x1
jax: 0.10.0
libtpu: 0.0.40
codegen_flags: <defaults>
</compile_context>

<pallas_src>
import jax
import jax.numpy as jnp
from jax.experimental import pallas as pl
from jax.experimental.pallas import tpu as pltpu


_LANE_COLS = 1024                    # 8 * 128: lane-dense layout, unmasked vst
_MAX_TILE_ROWS = 1024                # f32 block = 4 MiB; 2x(in+out) = 16 MiB in flight
_SMALL_INPUT_ELEMS = 1 << 20         # below ~1M elements plain XLA is already at roofline
_VMEM_LIMIT_BYTES = 32 * 1024 * 1024 # covers in-flight buffers; safe on v5e/v6e/v7x


def _make_pow_kernel(n: int):
    """Elementwise x**n kernel with a static integer exponent n."""
    n = int(n)
    n_abs = abs(n)

    def pow_kernel(x_ref, o_ref):
        # Upcast to f32 so the repeated-squaring chain doesn't accumulate
        # low-precision rounding (also sidesteps v5e's missing bf16 VALU).
        x = x_ref[...].astype(jnp.float32)
        if n_abs == 0:
            y = jnp.ones_like(x)
        else:
            # Exponentiation by squaring with a *static* exponent -> an
            # unrolled chain of VPU multiplies (no pow/transcendental).
            e = n_abs
            base = x
            acc = None
            while e > 0:
                if e & 1:
                    acc = base if acc is None else acc * base
                e >>= 1
                if e:
                    base = base * base
            y = acc
        if n < 0:
            # torch.pow supports negative integer exponents on float inputs.
            # Keep approx=False: the op is memory-bound so exact recip is free.
            y = pl.reciprocal(y, approx=False)
        o_ref[...] = y.astype(o_ref.dtype)

    return pow_kernel


def _num_multiplies(n: int) -> int:
    """# of VPU multiplies in the square-and-multiply chain (+1 div if n<0)."""
    n_abs = abs(int(n))
    mults = 0
    if n_abs > 1:
        e = n_abs
        have_acc = False
        while e > 0:
            if e & 1:
                if have_acc:
                    mults += 1
                have_acc = True
            e >>= 1
            if e:
                mults += 1
    return mults + (1 if n < 0 else 0)


def polynomial_forward(x: jax.Array, n: int, *,
                       min_pallas_elements: int = _SMALL_INPUT_ELEMS) -> jax.Array:
    """Equivalent of Polynomial(n).forward(x) == torch.pow(x, n)."""
    n = int(n)
    orig_shape = x.shape
    orig_dtype = x.dtype
    total = x.size

    if total == 0:
        return x

    # Small-tensor bypass: pallas_call launch/per-step overhead would dominate.
    if total < min_pallas_elements:
        return (x.astype(jnp.float32) ** n).astype(orig_dtype)

    # Flatten to a lane-dense (rows, 1024) slab.  Pad only to the next multiple
    # of 1024 (NOT to a tile multiple) so aligned inputs pay no extra HBM pass;
    # pad value 1.0 is safe for any n, including negative exponents.
    flat = x.reshape(-1)
    rows = pl.cdiv(total, _LANE_COLS)
    padded_len = rows * _LANE_COLS
    padded = padded_len != total
    if padded:
        pad = jnp.ones((padded_len - total,), dtype=orig_dtype)
        flat = jnp.concatenate([flat, pad])
    x2d = flat.reshape(rows, _LANE_COLS)

    # Tile: the biggest block that keeps in-flight VMEM modest.  Small inputs
    # use a single full-extent block; larger ones use (1024, 1024) blocks and
    # Pallas masks the ragged last block's stores (garbage in the OOB region
    # is harmless for this pure elementwise op).
    tile_r = rows if rows <= _MAX_TILE_ROWS else _MAX_TILE_ROWS
    grid = (pl.cdiv(rows, tile_r),)

    itemsize = jnp.dtype(orig_dtype).itemsize
    cost = pl.CostEstimate(
        flops=_num_multiplies(n) * padded_len,
        transcendentals=0,
        bytes_accessed=2 * padded_len * itemsize,
    )

    call_kwargs = {}
    if padded:
        # The padded slab is a fresh temporary -> safe to donate for in-place
        # HBM reuse.  In the no-pad case x2d may view a non-donated parameter,
        # where a must-alias would force a defensive copy -> skip aliasing.
        call_kwargs["input_output_aliases"] = {0: 0}

    out2d = pl.pallas_call(
        _make_pow_kernel(n),
        out_shape=jax.ShapeDtypeStruct((rows, _LANE_COLS), orig_dtype),
        grid_spec=pltpu.PrefetchScalarGridSpec(
            num_scalar_prefetch=0,
            grid=grid,
            in_specs=[pl.BlockSpec((tile_r, _LANE_COLS), lambda i: (i, 0))],
            out_specs=pl.BlockSpec((tile_r, _LANE_COLS), lambda i: (i, 0)),
        ),
        compiler_params=pltpu.CompilerParams(
            dimension_semantics=("parallel",),
            vmem_limit_bytes=_VMEM_LIMIT_BYTES,
        ),
        cost_estimate=cost,
        **call_kwargs,
    )(x2d)

    out_flat = out2d.reshape(-1)
    if padded:
        out_flat = out_flat[:total]
    return out_flat.reshape(orig_shape)


class PolynomialPallas:
    """Minimal JAX mirror of the PyTorch Polynomial module (forward only)."""

    def __init__(self, n: int, *, min_pallas_elements: int = _SMALL_INPUT_ELEMS):
        # nn.Parameter(torch.tensor(int(n)), requires_grad=False)
        self.n = int(n)
        self.min_pallas_elements = min_pallas_elements

    def __call__(self, x):
        return polynomial_forward(x, self.n,
                                  min_pallas_elements=self.min_pallas_elements)


if __name__ == "__main__":
    key = jax.random.PRNGKey(0)
    k1, k2, k3, k4 = jax.random.split(key, 4)

    # Primary case: small NCHW activation tensor, n = 3 (aligned, no pad).
    # min_pallas_elements=0 forces the Pallas path for these small demo inputs.
    x = jax.random.normal(k1, (2, 4, 16, 16), dtype=jnp.float32)
    n = 3
    mod = PolynomialPallas(n, min_pallas_elements=0)
    ref = x ** n
    out = jax.block_until_ready(mod(x))
    assert out.shape == x.shape and out.dtype == x.dtype
    assert jnp.allclose(out, ref, rtol=1e-6, atol=1e-6)

    # Negative exponent + element count not a multiple of 1024
    # (exercises the pad-with-ones path, the donated-alias path, and the
    #  exact-reciprocal chain).
    x_neg = jax.random.normal(k2, (3, 5, 7), dtype=jnp.float32)
    mod_neg = PolynomialPallas(-2, min_pallas_elements=0)
    ref_neg = x_neg ** (-2)
    out_neg = jax.block_until_ready(mod_neg(x_neg))
    assert jnp.allclose(out_neg, ref_neg, rtol=1e-5, atol=1e-6)

    # bf16 input: kernel computes in f32 and casts back at the store.
    x_bf = jax.random.normal(k3, (4, 8, 32), dtype=jnp.bfloat16)
    mod_bf = PolynomialPallas(4, min_pallas_elements=0)
    ref_bf = (x_bf.astype(jnp.float32) ** 4).astype(jnp.bfloat16)
    out_bf = jax.block_until_ready(mod_bf(x_bf))
    assert out_bf.dtype == jnp.bfloat16
    assert jnp.allclose(out_bf.astype(jnp.float32), ref_bf.astype(jnp.float32),
                        rtol=2e-2, atol=1e-2)

    # Multi-block path with a ragged last block: rows=1100 > 1024 -> grid=2,
    # the second block's trailing rows are masked stores.
    x_big = jax.random.normal(k4, (1100, 1024), dtype=jnp.float32)
    mod_big = PolynomialPallas(3, min_pallas_elements=0)
    ref_big = x_big ** 3
    out_big = jax.block_until_ready(mod_big(x_big))
    assert jnp.allclose(out_big, ref_big, rtol=1e-6, atol=1e-6)

    print("KERNEL_OK")
</pallas_src>

<mosaic_0001>
module attributes {stable_mosaic.version = 11 : i64} {
  func.func @pow_kernel(%arg0: i32, %arg1: memref<2x1024xf32, #tpu.memory_space<vmem>>, %arg2: memref<2x1024xf32, #tpu.memory_space<vmem>>) attributes {dimension_semantics = [#tpu.dimension_semantics<parallel>], iteration_bounds = array<i64: 1>, scalar_prefetch = 0 : i64, scratch_operands = 0 : i64, tpu.core_type = #tpu.core_type<tc>, window_params = [{transform_indices = @transform_0, window_bounds = array<i64: 2, 1024>}, {transform_indices = @transform_1, window_bounds = array<i64: 2, 1024>}]} {
    %c0 = arith.constant 0 : index
    %c0_0 = arith.constant 0 : index
    %0 = vector.load %arg1[%c0, %c0_0] : memref<2x1024xf32, #tpu.memory_space<vmem>>, vector<2x1024xf32>
    %1 = arith.mulf %0, %0 : vector<2x1024xf32>
    %2 = arith.mulf %0, %1 : vector<2x1024xf32>
    %c0_1 = arith.constant 0 : index
    %c0_2 = arith.constant 0 : index
    %3 = vector.load %arg2[%c0_1, %c0_2] : memref<2x1024xf32, #tpu.memory_space<vmem>>, vector<2x1024xf32>
    tpu.vector_store %arg2[%c0_1, %c0_2], %2 {strides = array<i32>} : memref<2x1024xf32, #tpu.memory_space<vmem>>, vector<2x1024xf32>,
    return
  }
  func.func @transform_0(%arg0: i32) -> (i32, i32) {
    %c0_i32 = arith.constant 0 : i32
    %c0_i32_0 = arith.constant 0 : i32
    return %arg0, %c0_i32 : i32, i32
  }
  func.func @transform_1(%arg0: i32) -> (i32, i32) {
    %c0_i32 = arith.constant 0 : i32
    %c0_i32_0 = arith.constant 0 : i32
    return %arg0, %c0_i32 : i32, i32
  }
}

</mosaic_0001>

<bundles_post_ra>
// kernel: tpu_custom_call.1
= control target key start
LH: loop header
LB: loop body
LE: loop exit
PB: predicated region body
PF: predicated region fallthrough
CT: control target
= control target key end

     0   :  { %6 = vsyncpa [#allocation3], 0  ;;  %s108_s0 = inlined_call_operand.hbm [shape: f32[2,1024], index: 0, kind: input, shape index: {}]   ;;  %s109_s1 = inlined_call_operand.hbm [shape: f32[2,1024], index: 1, kind: output, shape index: {}]  }
   0x1   :  { %7 = vsyncpa [#allocation4], 0  ;;  %s90_s6 = smov [#allocation2]  }
   0x2   :  { %s14_s7 = sshll.u32 %s90_s6, 4  ;;  %s15_s7 = int_to_ptr.vmem [resolvable:$true] %s14_s7 }
   0x3   :  { %s54_s8 = scalar_lea.vmem %s15_s7, 256  ;;  %p59_p1 = scmp.lt.s32.totalorder %s15_s7, %s15_s7 }
   0x4   :  { %p55_p0 = scmp.ne.s32.totalorder %s15_s7, %s54_s8  ;;  %p60_p2 = scmp.lt.s32.totalorder %s54_s8, %s54_s8 }
   0x6   :  { %p61_p3 = por %p60_p2, %p59_p1 }
   0x8   :  { %p62_p4 = pnand %p61_p3, %p55_p0 }
   0xa   :  { %65 = shalt.err (!%p62_p4)
}
   0xb   :  { %17 = dma.hbm_to_vmem [thread:$0]  %s108_s0, 256, %s15_s7, [#allocation3]  }
   0xc   :  { %86 = dma.done.wait [#allocation3], 256  }
   0xd   :  { %87 = vsyncadd [#allocation3], 4294967040  ;;  %v21_v0 = vld [vmem:[#allocation2] sm:$0xff]  ;;  %v22_v1 = vld [vmem:[#allocation2 + $0x8] sm:$0xff]  ;;  %s91_s11 = smov [#allocation5]  }
   0xe   :  { %s35_s12 = sshll.u32 %s91_s11, 4  ;;  %v23_v2 = vmul.f32 %v21_v0, %v21_v0  ;;  %v24_v3 = vmul.f32 %v22_v1, %v22_v1  ;;  %s36_s12 = int_to_ptr.vmem [resolvable:$true] %s35_s12 }
   0xf   :  { %s66_s13 = scalar_lea.vmem %s36_s12, 256  ;;  %p71_p6 = scmp.lt.s32.totalorder %s36_s12, %s36_s12 }
  0x10   :  { %v25_v4 = vmul.f32 %v23_v2, %v21_v0  ;;  %v26_v5 = vmul.f32 %v24_v3, %v22_v1  ;;  %p67_p5 = scmp.ne.s32.totalorder %s36_s12, %s66_s13  ;;  %p72_p7 = scmp.lt.s32.totalorder %s66_s13, %s66_s13 }
  0x12   :  { %27 = vst [vmem:[#allocation5] sm:$0xff] %v25_v4  ;;  %28 = vst [vmem:[#allocation5 + $0x8] sm:$0xff] %v26_v5  ;;  %p73_p8 = por %p72_p7, %p71_p6 }
  0x14   :  { %p74_p9 = pnand %p73_p8, %p67_p5 }
  0x16   :  { %77 = shalt.err (!%p74_p9)
}
  0x17   :  { %38 = dma.vmem_to_hbm [thread:$0]  %s36_s12, 256, %s109_s1, [#allocation4]  }
  0x18   :  { %88 = dma.done.wait [#allocation4], 256  }
  0x19   :  { %89 = vsyncadd [#allocation4], 4294967040 }
  0x1a   :  { %42 = vsyncpa [#allocation3], 1 }
  0x1b   :  { %43 = vsyncpa [#allocation4], 1 }

</bundles_post_ra>
